<compile_context>
chip_gen: v7x
topology: tpu7x:2x2x1
jax: 0.10.0
libtpu: 0.0.40
codegen_flags: <defaults>
</compile_context>

<pallas_src>
import jax
import jax.numpy as jnp
from jax.experimental import pallas as pl
from jax.experimental.pallas import tpu as pltpu  # noqa: F401  (imported per convention)


def _stack_kernel(a_ref, b_ref, o_ref):
    # a_ref, b_ref: (8, 128)   -- flattened (C, H, W) input, lane-dense.
    # o_ref:        (64, 128)  -- flattened (2, 2, 2, C, H, W) output.
    #
    # Row-major flattening of out[i, j, k, c, h, w] means the output is 8
    # contiguous 1024-element blocks: blocks 0..3 (i == 0) are copies of a,
    # blocks 4..7 (i == 1) are copies of b.  As (64, 128) rows:
    #   rows  0..31 = tile(a, (4, 1))
    #   rows 32..63 = tile(b, (4, 1))
    a = a_ref[...]
    b = b_ref[...]
    o_ref[0:32, :] = jnp.tile(a, (4, 1))
    o_ref[32:64, :] = jnp.tile(b, (4, 1))


def simple_stack(a, b):
    assert a.shape == b.shape and a.dtype == b.dtype
    C, H, W = a.shape
    n = C * H * W
    assert n % 128 == 0 and (n // 128) % 8 == 0, "need lane/sublane-aligned flatten"

    rows = n // 128            # 8 for (4, 16, 16)
    a2 = a.reshape(rows, 128)  # lane-dense view of a (free reshape, contiguous)
    b2 = b.reshape(rows, 128)

    out_flat = pl.pallas_call(
        _stack_kernel,
        out_shape=jax.ShapeDtypeStruct((8 * rows, 128), a.dtype),
    )(a2, b2)

    # Free metadata reshape back to the PyTorch stack layout.
    return out_flat.reshape(2, 2, 2, C, H, W)


if __name__ == "__main__":
    key = jax.random.PRNGKey(0)
    ka, kb = jax.random.split(key)
    a = jax.random.normal(ka, (4, 16, 16), dtype=jnp.float32)
    b = jax.random.normal(kb, (4, 16, 16), dtype=jnp.float32)

    out = simple_stack(a, b)
    out = jax.block_until_ready(out)

    # Reference in plain JAX (mirrors the PyTorch module).
    c = jnp.stack((a, b), 0)
    d = jnp.stack((c, c), 1)
    ref = jnp.stack((d, d), 2)

    assert out.shape == (2, 2, 2, 4, 16, 16), out.shape
    assert jnp.array_equal(out, ref), "mismatch vs reference"
    print("KERNEL_OK")
</pallas_src>

<mosaic_0001>
module attributes {stable_mosaic.version = 11 : i64} {
  func.func @_stack_kernel(%arg0: memref<8x128xf32, #tpu.memory_space<vmem>>, %arg1: memref<8x128xf32, #tpu.memory_space<vmem>>, %arg2: memref<64x128xf32, #tpu.memory_space<vmem>>) attributes {dimension_semantics = [], scalar_prefetch = 0 : i64, scratch_operands = 0 : i64, tpu.core_type = #tpu.core_type<tc>} {
    %c0 = arith.constant 0 : index
    %c0_0 = arith.constant 0 : index
    %0 = vector.load %arg0[%c0, %c0_0] : memref<8x128xf32, #tpu.memory_space<vmem>>, vector<8x128xf32>
    %c0_1 = arith.constant 0 : index
    %c0_2 = arith.constant 0 : index
    %1 = vector.load %arg1[%c0_1, %c0_2] : memref<8x128xf32, #tpu.memory_space<vmem>>, vector<8x128xf32>
    %2 = tpu.concatenate %0, %0, %0, %0 in 0 : vector<8x128xf32>, vector<8x128xf32>, vector<8x128xf32>, vector<8x128xf32> -> vector<32x128xf32>
    %c0_3 = arith.constant 0 : index
    %c0_4 = arith.constant 0 : index
    %3 = vector.load %arg2[%c0_3, %c0_4] : memref<64x128xf32, #tpu.memory_space<vmem>>, vector<32x128xf32>
    tpu.vector_store %arg2[%c0_3, %c0_4], %2 {strides = array<i32>} : memref<64x128xf32, #tpu.memory_space<vmem>>, vector<32x128xf32>,
    %4 = tpu.concatenate %1, %1, %1, %1 in 0 : vector<8x128xf32>, vector<8x128xf32>, vector<8x128xf32>, vector<8x128xf32> -> vector<32x128xf32>
    %c32 = arith.constant 32 : index
    %c0_5 = arith.constant 0 : index
    %5 = vector.load %arg2[%c32, %c0_5] : memref<64x128xf32, #tpu.memory_space<vmem>>, vector<32x128xf32>
    tpu.vector_store %arg2[%c32, %c0_5], %4 {strides = array<i32>} : memref<64x128xf32, #tpu.memory_space<vmem>>, vector<32x128xf32>,
    return
  }
}

</mosaic_0001>

<bundles_post_ra>
// kernel: tpu_custom_call.1
= control target key start
LH: loop header
LB: loop body
LE: loop exit
PB: predicated region body
PF: predicated region fallthrough
CT: control target
= control target key end

     0   :  { %7 = vsyncpa [#allocation3], 0  ;;  %s197_s0 = inlined_call_operand.hbm [shape: f32[8,128], index: 0, kind: input, shape index: {}]   ;;  %s198_s1 = inlined_call_operand.hbm [shape: f32[8,128], index: 1, kind: input, shape index: {}]   ;;  %s199_s2 = inlined_call_operand.hbm [shape: f32[64,128], index: 2, kind: output, shape index: {}]  }
   0x1   :  { %8 = vsyncpa [#allocation6], 0 }
   0x2   :  { %9 = vsyncpa [#allocation4], 0  ;;  %s141_s9 = smov [#allocation2]   ;;  %s142_s11 = smov [#allocation5]  }
   0x3   :  { %s16_s10 = sshll.u32 %s141_s9, 4  ;;  %s26_s12 = sshll.u32 %s142_s11, 4  ;;  %s17_s10 = int_to_ptr.vmem [resolvable:$true] %s16_s10  ;;  %s27_s12 = int_to_ptr.vmem [resolvable:$true] %s26_s12 }
   0x4   :  { %s69_s15 = scalar_lea.hbm %s197_s0, 128 }
   0x5   :  { %p70_p0 = scmp.ne.s32.totalorder %s197_s0, %s69_s15  ;;  %p73_p1 = scmp.lt.u32.totalorder %s69_s15, %s197_s0 }
   0x7   :  { %p75_p2 = pnand %p73_p1, %p70_p0 }
   0x9   :  { %78 = shalt.err (!%p75_p2)
}
   0xa   :  { %s79_s20 = scalar_lea.vmem %s17_s10, 128  ;;  %p84_p4 = scmp.lt.s32.totalorder %s17_s10, %s17_s10 }
   0xb   :  { %p80_p3 = scmp.ne.s32.totalorder %s17_s10, %s79_s20  ;;  %p85_p5 = scmp.lt.s32.totalorder %s79_s20, %s79_s20 }
   0xd   :  { %p86_p6 = por %p85_p5, %p84_p4 }
   0xf   :  { %p87_p7 = pnand %p86_p6, %p80_p3 }
  0x11   :  { %90 = shalt.err (!%p87_p7)
}
  0x12   :  { %19 = dma.hbm_to_vmem [thread:$0]  %s197_s0, 128, %s17_s10, [#allocation3]  }
  0x13   :  { %s91_s25 = scalar_lea.hbm %s198_s1, 128 }
  0x14   :  { %p92_p8 = scmp.ne.s32.totalorder %s198_s1, %s91_s25  ;;  %p95_p9 = scmp.lt.u32.totalorder %s91_s25, %s198_s1 }
  0x16   :  { %p97_p10 = pnand %p95_p9, %p92_p8 }
  0x18   :  { %100 = shalt.err (!%p97_p10)
}
  0x19   :  { %s101_s30 = scalar_lea.vmem %s27_s12, 128  ;;  %p106_p12 = scmp.lt.s32.totalorder %s27_s12, %s27_s12 }
  0x1a   :  { %p102_p11 = scmp.ne.s32.totalorder %s27_s12, %s101_s30  ;;  %p107_p13 = scmp.lt.s32.totalorder %s101_s30, %s101_s30 }
  0x1c   :  { %p108_p0 = por %p107_p13, %p106_p12 }
  0x1e   :  { %p109_p1 = pnand %p108_p0, %p102_p11 }
  0x20   :  { %112 = shalt.err (!%p109_p1)
}
  0x21   :  { %29 = dma.hbm_to_vmem [thread:$0]  %s198_s1, 128, %s27_s12, [#allocation6]  }
  0x22   :  { %135 = dma.done.wait [#allocation3], 128  }
  0x23   :  { %136 = vsyncadd [#allocation3], 4294967168 }
  0x24   :  { %137 = dma.done.wait [#allocation6], 128  }
  0x25   :  { %138 = vsyncadd [#allocation6], 4294967168  ;;  %s143_s4 = smov [#allocation7]   ;;  %v36_v0 = vld [vmem:[#allocation2] sm:$0xff]  ;;  %v37_v1 = vld [vmem:[#allocation5] sm:$0xff] }
  0x26   :  { %s51_s5 = sshll.u32 %s143_s4, 4  ;;  %38 = vst [vmem:[#allocation7] sm:$0xff] %v36_v0  ;;  %39 = vst [vmem:[#allocation7 + $0x8] sm:$0xff] %v36_v0  ;;  %s52_s5 = int_to_ptr.vmem [resolvable:$true] %s51_s5 }
  0x27   :  { %40 = vst [vmem:[#allocation7 + $0x10] sm:$0xff] %v36_v0  ;;  %41 = vst [vmem:[#allocation7 + $0x18] sm:$0xff] %v36_v0  ;;  %s113_s6 = scalar_lea.vmem %s52_s5, 1024  ;;  %p118_p3 = scmp.lt.s32.totalorder %s52_s5, %s52_s5 }
  0x28   :  { %42 = vst [vmem:[#allocation7 + $0x20] sm:$0xff] %v37_v1  ;;  %43 = vst [vmem:[#allocation7 + $0x28] sm:$0xff] %v37_v1  ;;  %p114_p2 = scmp.ne.s32.totalorder %s52_s5, %s113_s6  ;;  %p119_p4 = scmp.lt.s32.totalorder %s113_s6, %s113_s6 }
  0x29   :  { %44 = vst [vmem:[#allocation7 + $0x30] sm:$0xff] %v37_v1  ;;  %45 = vst [vmem:[#allocation7 + $0x38] sm:$0xff] %v37_v1 }
  0x2a   :  { %p120_p5 = por %p119_p4, %p118_p3 }
  0x2c   :  { %p121_p6 = pnand %p120_p5, %p114_p2 }
  0x2e   :  { %124 = shalt.err (!%p121_p6)
}
  0x2f   :  { %s125_s8 = scalar_lea.hbm %s199_s2, 1024 }
  0x30   :  { %p126_p7 = scmp.ne.s32.totalorder %s199_s2, %s125_s8  ;;  %p129_p8 = scmp.lt.u32.totalorder %s125_s8, %s199_s2 }
  0x32   :  { %p131_p9 = pnand %p129_p8, %p126_p7 }
  0x34   :  { %134 = shalt.err (!%p131_p9)
}
  0x35   :  { %s144_s13 = smov 128   ;;  %s145_s14 = smov 8  }
  0x36   :  { %57 = dma.vmem_to_hbm [thread:$0]  %s52_s5, 1024, %s199_s2, [#allocation4], %s144_s13, %s144_s13, %s145_s14  }
  0x37   :  { %139 = dma.done.wait [#allocation4], 1024  }
  0x38   :  { %140 = vsyncadd [#allocation4], 4294966272 }
  0x39   :  { %61 = vsyncpa [#allocation3], 1 }
  0x3a   :  { %62 = vsyncpa [#allocation6], 1 }
  0x3b   :  { %63 = vsyncpa [#allocation4], 1 }

</bundles_post_ra>
